<compile_context>
chip_gen: v7x
topology: tpu7x:2x2x1
jax: 0.10.0
libtpu: 0.0.40
codegen_flags: <defaults>
</compile_context>

<pallas_src>
import jax
import jax.numpy as jnp
from jax.experimental import pallas as pl
from jax.experimental.pallas import tpu as pltpu


def _round_up(n, m):
    return ((n + m - 1) // m) * m


def _feature_align(d):
    # 256-align large dims to fill the 2x256^2 MXU (v6e/v7x); 128 for small
    # dims (also matches v5e's 4x128^2 MXU) to avoid extra padded lanes.
    return _round_up(d, 256 if d >= 256 else 128)


def mlp_kernel(x_ref, w1_ref, b1_ref, w2_ref, b2_ref, w3_ref, b3_ref, o_ref):
    cdt = w1_ref.dtype
    # In-VMEM cast (VPU) keeps the x HBM traffic to a single pass at its
    # native dtype while the MXU runs in the (bf16) compute dtype.
    x = x_ref[...].astype(cdt)
    # fc1 + relu (f32 accumulation on MXU, f32 bias/ReLU epilogue)
    h1 = jnp.dot(x, w1_ref[...], preferred_element_type=jnp.float32)
    h1 = jnp.maximum(h1 + b1_ref[...], 0.0)
    # fc2 + relu
    h2 = jnp.dot(h1.astype(cdt), w2_ref[...], preferred_element_type=jnp.float32)
    h2 = jnp.maximum(h2 + b2_ref[...], 0.0)
    # fc3 (no activation)
    out = jnp.dot(h2.astype(cdt), w3_ref[...], preferred_element_type=jnp.float32)
    o_ref[...] = (out + b3_ref[...]).astype(o_ref.dtype)


def mlp_forward(x, w1, b1, w2, b2, w3, b3, *,
                batch_tile=512, compute_dtype=jnp.bfloat16,
                vmem_limit_bytes=None):
    """x: (B, ...) flattened to (B, input_dim). Returns (B, output_dim)."""
    B = x.shape[0]
    x2d = x.reshape(B, -1)                        # torch: x.view(x.size(0), -1)
    din, h1d = w1.shape
    _, h2d = w2.shape
    _, dout = w3.shape

    out_dtype = x2d.dtype
    cdt = jnp.dtype(compute_dtype)

    # Only the (small, write-once) weight/bias operands get padded; x does not.
    h1_p = _feature_align(h1d)
    h2_p = _feature_align(h2d)
    dout_p = _feature_align(dout)

    def pad2(a, rows, cols, dtype):
        a = a.astype(dtype)
        pr, pc = rows - a.shape[0], cols - a.shape[1]
        return jnp.pad(a, ((0, pr), (0, pc))) if (pr or pc) else a

    w1p = pad2(w1, din, h1_p, cdt)
    w2p = pad2(w2, h1_p, h2_p, cdt)
    w3p = pad2(w3, h2_p, dout_p, cdt)
    b1p = pad2(b1.reshape(1, -1), 1, h1_p, jnp.float32)
    b2p = pad2(b2.reshape(1, -1), 1, h2_p, jnp.float32)
    b3p = pad2(b3.reshape(1, -1), 1, dout_p, jnp.float32)

    # --- VMEM budget (per TensorCore), generation-aware ---------------------
    try:
        vmem_cap = int(pltpu.get_tpu_info().vmem_capacity_bytes)
    except Exception:
        vmem_cap = None
    usable = int(0.85 * vmem_cap) if vmem_cap else 64 * 1024 * 1024

    isz_c = cdt.itemsize
    isz_x = jnp.dtype(x2d.dtype).itemsize
    isz_o = jnp.dtype(out_dtype).itemsize

    def vmem_need(tb_):
        weights = (din * h1_p + h1_p * h2_p + h2_p * dout_p) * isz_c   # Buffered(1)
        biases = (h1_p + h2_p + dout_p) * 4
        io = 2 * tb_ * din * isz_x + 2 * tb_ * dout_p * isz_o          # double-buffered
        interm = tb_ * (din * isz_c + (h1_p + h2_p) * (4 + isz_c) + dout_p * 4)
        return weights + biases + io + interm

    # --- Batch tile: big enough to amortize per-step overhead, small enough to
    # fit VMEM, and (when B allows) >= 2 grid steps so both v7x TCs get work.
    tb = max(8, _round_up(min(int(batch_tile), _round_up(B, 8)), 8))
    tb = min(tb, max(8, _round_up(pl.cdiv(B, 2), 8)))
    while tb > 8 and vmem_need(tb) > usable:
        tb = max(8, _round_up(tb // 2, 8))
    grid = (pl.cdiv(B, tb),)

    if vmem_limit_bytes is None:
        vmem_limit_bytes = int(min(max(int(1.25 * vmem_need(tb)),
                                       32 * 1024 * 1024), usable))

    # --- Cost estimate (scheduler hint) --------------------------------------
    flops = 2 * B * (din * h1d + h1d * h2d + h2d * dout)
    bytes_accessed = (x2d.size * isz_x
                      + (w1p.size + w2p.size + w3p.size) * isz_c
                      + (b1p.size + b2p.size + b3p.size) * 4
                      + B * dout_p * isz_o)
    cost = pl.CostEstimate(flops=flops, transcendentals=0,
                           bytes_accessed=bytes_accessed)

    def call(single_buffer_weights):
        def w_spec(shape):
            if single_buffer_weights:
                return pl.BlockSpec(shape, lambda i: (0, 0),
                                    pipeline_mode=pl.Buffered(1))
            return pl.BlockSpec(shape, lambda i: (0, 0))

        in_specs = [
            pl.BlockSpec((tb, din), lambda i: (i, 0)),   # x tile (unpadded K)
            w_spec((din, h1_p)),                         # w1 (resident)
            w_spec((1, h1_p)),                           # b1
            w_spec((h1_p, h2_p)),                        # w2
            w_spec((1, h2_p)),                           # b2
            w_spec((h2_p, dout_p)),                      # w3
            w_spec((1, dout_p)),                         # b3
        ]
        out_specs = pl.BlockSpec((tb, dout_p), lambda i: (i, 0))

        return pl.pallas_call(
            mlp_kernel,
            out_shape=jax.ShapeDtypeStruct((B, dout_p), out_dtype),
            grid=grid,
            in_specs=in_specs,
            out_specs=out_specs,
            compiler_params=pltpu.CompilerParams(
                dimension_semantics=("parallel",),
                vmem_limit_bytes=vmem_limit_bytes),
            cost_estimate=cost,
        )(x2d, w1p, b1p, w2p, b2p, w3p, b3p)

    try:
        out_padded = call(True)          # single-buffered resident weights
    except Exception:
        out_padded = call(False)         # fallback if Buffered(1) is rejected

    # TODO(synk): when resident weights exceed ~50% of this generation's VMEM,
    # switch to a K/N-tiled grid with a pl.when-initialized f32 accumulator
    # instead of forcing full weight residency.
    return out_padded if dout_p == dout else out_padded[:, :dout]


def init_linear_params(key, in_features, out_features, dtype=jnp.float32):
    """Deterministic init matching nn.Linear shapes (weight stored transposed)."""
    kw, kb = jax.random.split(key)
    bound = 1.0 / (in_features ** 0.5)
    w = jax.random.uniform(kw, (in_features, out_features), dtype,
                           minval=-bound, maxval=bound)
    b = jax.random.uniform(kb, (out_features,), dtype,
                           minval=-bound, maxval=bound)
    return w, b


def reference_mlp(x, w1, b1, w2, b2, w3, b3):
    x2d = x.reshape(x.shape[0], -1)
    h1 = jnp.maximum(x2d @ w1 + b1, 0.0)
    h2 = jnp.maximum(h1 @ w2 + b2, 0.0)
    return h2 @ w3 + b3


if __name__ == "__main__":
    # Small shapes consistent with the module: batch=2, channels=4, spatial=8
    # -> input_dim = 4*8*8 = 256, hidden_dim1 = 128, hidden_dim2 = 64, output_dim = 10
    B, C, H, W = 2, 4, 8, 8
    input_dim = C * H * W
    hidden_dim1, hidden_dim2, output_dim = 128, 64, 10

    key = jax.random.PRNGKey(0)
    kx, k1, k2, k3 = jax.random.split(key, 4)

    x = jax.random.normal(kx, (B, C, H, W), jnp.float32)
    w1, b1 = init_linear_params(k1, input_dim, hidden_dim1)
    w2, b2 = init_linear_params(k2, hidden_dim1, hidden_dim2)
    w3, b3 = init_linear_params(k3, hidden_dim2, output_dim)

    ref = reference_mlp(x, w1, b1, w2, b2, w3, b3)

    # Default fast path: bf16 MXU compute with f32 accumulation.
    out_bf16 = mlp_forward(x, w1, b1, w2, b2, w3, b3)
    out_bf16 = jax.block_until_ready(out_bf16)
    assert out_bf16.shape == (B, output_dim)
    assert jnp.allclose(out_bf16, ref, atol=1e-1, rtol=1e-1)

    # f32 compute path for exact parity with the reference.
    out_f32 = mlp_forward(x, w1, b1, w2, b2, w3, b3,
                          compute_dtype=jnp.float32)
    out_f32 = jax.block_until_ready(out_f32)
    assert out_f32.shape == (B, output_dim)
    assert jnp.allclose(out_f32, ref, atol=1e-5, rtol=1e-5)

    print("KERNEL_OK")
</pallas_src>

<mosaic_0001>
module attributes {stable_mosaic.version = 11 : i64} {
  func.func @mlp_kernel(%arg0: i32, %arg1: memref<8x256xf32, #tpu.memory_space<vmem>>, %arg2: memref<256x128xbf16, #tpu.memory_space<vmem>>, %arg3: memref<1x128xf32, #tpu.memory_space<vmem>>, %arg4: memref<128x128xbf16, #tpu.memory_space<vmem>>, %arg5: memref<1x128xf32, #tpu.memory_space<vmem>>, %arg6: memref<128x128xbf16, #tpu.memory_space<vmem>>, %arg7: memref<1x128xf32, #tpu.memory_space<vmem>>, %arg8: memref<8x128xf32, #tpu.memory_space<vmem>>) attributes {dimension_semantics = [#tpu.dimension_semantics<parallel>], iteration_bounds = array<i64: 1>, scalar_prefetch = 0 : i64, scratch_operands = 0 : i64, tpu.core_type = #tpu.core_type<tc>, window_params = [{transform_indices = @transform_0, window_bounds = array<i64: 8, 256>}, {pipeline_mode = #tpu.pipeline_mode<synchronous>, transform_indices = @transform_1, window_bounds = array<i64: 256, 128>}, {pipeline_mode = #tpu.pipeline_mode<synchronous>, transform_indices = @transform_2, window_bounds = array<i64: 1, 128>}, {pipeline_mode = #tpu.pipeline_mode<synchronous>, transform_indices = @transform_3, window_bounds = array<i64: 128, 128>}, {pipeline_mode = #tpu.pipeline_mode<synchronous>, transform_indices = @transform_4, window_bounds = array<i64: 1, 128>}, {pipeline_mode = #tpu.pipeline_mode<synchronous>, transform_indices = @transform_5, window_bounds = array<i64: 128, 128>}, {pipeline_mode = #tpu.pipeline_mode<synchronous>, transform_indices = @transform_6, window_bounds = array<i64: 1, 128>}, {transform_indices = @transform_7, window_bounds = array<i64: 8, 128>}]} {
    %c0 = arith.constant 0 : index
    %c0_0 = arith.constant 0 : index
    %0 = vector.load %arg1[%c0, %c0_0] : memref<8x256xf32, #tpu.memory_space<vmem>>, vector<8x256xf32>
    %1 = arith.truncf %0 : vector<8x256xf32> to vector<8x256xbf16>
    %c0_1 = arith.constant 0 : index
    %c0_2 = arith.constant 0 : index
    %2 = vector.load %arg2[%c0_1, %c0_2] : memref<256x128xbf16, #tpu.memory_space<vmem>>, vector<256x128xbf16>
    %cst = arith.constant dense<0.000000e+00> : vector<8x128xf32>
    %3 = tpu.matmul %1, %2, %cst {dimension_numbers = #tpu.dot_dimension_numbers<[1], [0], [0], [1], [0, 0, 1, 1], [], []>} : vector<8x256xbf16>, vector<256x128xbf16>, vector<8x128xf32> -> vector<8x128xf32>
    %c0_3 = arith.constant 0 : index
    %c0_4 = arith.constant 0 : index
    %4 = vector.load %arg3[%c0_3, %c0_4] : memref<1x128xf32, #tpu.memory_space<vmem>>, vector<1x128xf32>
    %5 = vector.broadcast %4 : vector<1x128xf32> to vector<8x128xf32>
    %6 = arith.addf %3, %5 : vector<8x128xf32>
    %cst_5 = arith.constant 0.000000e+00 : f32
    %7 = vector.broadcast %cst_5 : f32 to vector<8x128xf32>
    %8 = arith.maximumf %6, %7 : vector<8x128xf32>
    %9 = arith.truncf %8 : vector<8x128xf32> to vector<8x128xbf16>
    %c0_6 = arith.constant 0 : index
    %c0_7 = arith.constant 0 : index
    %10 = vector.load %arg4[%c0_6, %c0_7] : memref<128x128xbf16, #tpu.memory_space<vmem>>, vector<128x128xbf16>
    %cst_8 = arith.constant dense<0.000000e+00> : vector<8x128xf32>
    %11 = tpu.matmul %9, %10, %cst_8 {dimension_numbers = #tpu.dot_dimension_numbers<[1], [0], [0], [1], [0, 0, 1, 1], [], []>} : vector<8x128xbf16>, vector<128x128xbf16>, vector<8x128xf32> -> vector<8x128xf32>
    %c0_9 = arith.constant 0 : index
    %c0_10 = arith.constant 0 : index
    %12 = vector.load %arg5[%c0_9, %c0_10] : memref<1x128xf32, #tpu.memory_space<vmem>>, vector<1x128xf32>
    %13 = vector.broadcast %12 : vector<1x128xf32> to vector<8x128xf32>
    %14 = arith.addf %11, %13 : vector<8x128xf32>
    %cst_11 = arith.constant 0.000000e+00 : f32
    %15 = vector.broadcast %cst_11 : f32 to vector<8x128xf32>
    %16 = arith.maximumf %14, %15 : vector<8x128xf32>
    %17 = arith.truncf %16 : vector<8x128xf32> to vector<8x128xbf16>
    %c0_12 = arith.constant 0 : index
    %c0_13 = arith.constant 0 : index
    %18 = vector.load %arg6[%c0_12, %c0_13] : memref<128x128xbf16, #tpu.memory_space<vmem>>, vector<128x128xbf16>
    %cst_14 = arith.constant dense<0.000000e+00> : vector<8x128xf32>
    %19 = tpu.matmul %17, %18, %cst_14 {dimension_numbers = #tpu.dot_dimension_numbers<[1], [0], [0], [1], [0, 0, 1, 1], [], []>} : vector<8x128xbf16>, vector<128x128xbf16>, vector<8x128xf32> -> vector<8x128xf32>
    %c0_15 = arith.constant 0 : index
    %c0_16 = arith.constant 0 : index
    %20 = vector.load %arg7[%c0_15, %c0_16] : memref<1x128xf32, #tpu.memory_space<vmem>>, vector<1x128xf32>
    %21 = vector.broadcast %20 : vector<1x128xf32> to vector<8x128xf32>
    %22 = arith.addf %19, %21 : vector<8x128xf32>
    %c0_17 = arith.constant 0 : index
    %c0_18 = arith.constant 0 : index
    %23 = vector.load %arg8[%c0_17, %c0_18] : memref<8x128xf32, #tpu.memory_space<vmem>>, vector<8x128xf32>
    tpu.vector_store %arg8[%c0_17, %c0_18], %22 {strides = array<i32>} : memref<8x128xf32, #tpu.memory_space<vmem>>, vector<8x128xf32>,
    return
  }
  func.func @transform_0(%arg0: i32) -> (i32, i32) {
    %c0_i32 = arith.constant 0 : i32
    %c0_i32_0 = arith.constant 0 : i32
    return %arg0, %c0_i32 : i32, i32
  }
  func.func @transform_1(%arg0: i32) -> (i32, i32) {
    %c0_i32 = arith.constant 0 : i32
    %c0_i32_0 = arith.constant 0 : i32
    %c0_i32_1 = arith.constant 0 : i32
    return %c0_i32, %c0_i32_0 : i32, i32
  }
  func.func @transform_2(%arg0: i32) -> (i32, i32) {
    %c0_i32 = arith.constant 0 : i32
    %c0_i32_0 = arith.constant 0 : i32
    %c0_i32_1 = arith.constant 0 : i32
    return %c0_i32, %c0_i32_0 : i32, i32
  }
  func.func @transform_3(%arg0: i32) -> (i32, i32) {
    %c0_i32 = arith.constant 0 : i32
    %c0_i32_0 = arith.constant 0 : i32
    %c0_i32_1 = arith.constant 0 : i32
    return %c0_i32, %c0_i32_0 : i32, i32
  }
  func.func @transform_4(%arg0: i32) -> (i32, i32) {
    %c0_i32 = arith.constant 0 : i32
    %c0_i32_0 = arith.constant 0 : i32
    %c0_i32_1 = arith.constant 0 : i32
    return %c0_i32, %c0_i32_0 : i32, i32
  }
  func.func @transform_5(%arg0: i32) -> (i32, i32) {
    %c0_i32 = arith.constant 0 : i32
    %c0_i32_0 = arith.constant 0 : i32
    %c0_i32_1 = arith.constant 0 : i32
    return %c0_i32, %c0_i32_0 : i32, i32
  }
  func.func @transform_6(%arg0: i32) -> (i32, i32) {
    %c0_i32 = arith.constant 0 : i32
    %c0_i32_0 = arith.constant 0 : i32
    %c0_i32_1 = arith.constant 0 : i32
    return %c0_i32, %c0_i32_0 : i32, i32
  }
  func.func @transform_7(%arg0: i32) -> (i32, i32) {
    %c0_i32 = arith.constant 0 : i32
    %c0_i32_0 = arith.constant 0 : i32
    return %arg0, %c0_i32 : i32, i32
  }
}

module attributes {stable_mosaic.version = 11 : i64} {
  func.func @mlp_kernel(%arg0: i32, %arg1: memref<8x256xf32, #tpu.memory_space<vmem>>, %arg2: memref<256x128xbf16, #tpu.memory_space<vmem>>, %arg3: memref<1x128xf32, #tpu.memory_space<vmem>>, %arg4: memref<128x128xbf16, #tpu.memory_space<vmem>>, %arg5: memref<1x128xf32, #tpu.memory_space<vmem>>, %arg6: memref<128x128xbf16, #tpu.memory_space<vmem>>, %arg7: memref<1x128xf32, #tpu.memory_space<vmem>>, %arg8: memref<8x128xf32, #tpu.memory_space<vmem>>) attributes {dimension_semantics = [#tpu.dimension_semantics<parallel>], iteration_bounds = array<i64: 1>, scalar_prefetch = 0 : i64, scratch_operands = 0 : i64, tpu.core_type = #tpu.core_type<tc>, window_params = [{transform_indices = @transform_0, window_bounds = array<i64: 8, 256>}, {pipeline_mode = #tpu.pipeline_mode<synchronous>, transform_indices = @transform_1, window_bounds = array<i64: 256, 128>}, {pipeline_mode = #tpu.pipeline_mode<synchronous>, transform_indices = @transform_2, window_bounds = array<i64: 1, 128>}, {pipeline_mode = #tpu.pipeline_mode<synchronous>, transform_indices = @transform_3, window_bounds = array<i64: 128, 128>}, {pipeline_mode = #tpu.pipeline_mode<synchronous>, transform_indices = @transform_4, window_bounds = array<i64: 1, 128>}, {pipeline_mode = #tpu.pipeline_mode<synchronous>, transform_indices = @transform_5, window_bounds = array<i64: 128, 128>}, {pipeline_mode = #tpu.pipeline_mode<synchronous>, transform_indices = @transform_6, window_bounds = array<i64: 1, 128>}, {transform_indices = @transform_7, window_bounds = array<i64: 8, 128>}]} {
    %c0 = arith.constant 0 : index
    %c0_0 = arith.constant 0 : index
    %0 = vector.load %arg1[%c0, %c0_0] : memref<8x256xf32, #tpu.memory_space<vmem>>, vector<8x256xf32>
    %1 = arith.truncf %0 : vector<8x256xf32> to vector<8x256xbf16>
    %c0_1 = arith.constant 0 : index
    %c0_2 = arith.constant 0 : index
    %2 = vector.load %arg2[%c0_1, %c0_2] : memref<256x128xbf16, #tpu.memory_space<vmem>>, vector<256x128xbf16>
    %cst = arith.constant dense<0.000000e+00> : vector<8x128xf32>
    %3 = tpu.matmul %1, %2, %cst {dimension_numbers = #tpu.dot_dimension_numbers<[1], [0], [0], [1], [0, 0, 1, 1], [], []>} : vector<8x256xbf16>, vector<256x128xbf16>, vector<8x128xf32> -> vector<8x128xf32>
    %c0_3 = arith.constant 0 : index
    %c0_4 = arith.constant 0 : index
    %4 = vector.load %arg3[%c0_3, %c0_4] : memref<1x128xf32, #tpu.memory_space<vmem>>, vector<1x128xf32>
    %5 = vector.broadcast %4 : vector<1x128xf32> to vector<8x128xf32>
    %6 = arith.addf %3, %5 : vector<8x128xf32>
    %cst_5 = arith.constant 0.000000e+00 : f32
    %7 = vector.broadcast %cst_5 : f32 to vector<8x128xf32>
    %8 = arith.maximumf %6, %7 : vector<8x128xf32>
    %9 = arith.truncf %8 : vector<8x128xf32> to vector<8x128xbf16>
    %c0_6 = arith.constant 0 : index
    %c0_7 = arith.constant 0 : index
    %10 = vector.load %arg4[%c0_6, %c0_7] : memref<128x128xbf16, #tpu.memory_space<vmem>>, vector<128x128xbf16>
    %cst_8 = arith.constant dense<0.000000e+00> : vector<8x128xf32>
    %11 = tpu.matmul %9, %10, %cst_8 {dimension_numbers = #tpu.dot_dimension_numbers<[1], [0], [0], [1], [0, 0, 1, 1], [], []>} : vector<8x128xbf16>, vector<128x128xbf16>, vector<8x128xf32> -> vector<8x128xf32>
    %c0_9 = arith.constant 0 : index
    %c0_10 = arith.constant 0 : index
    %12 = vector.load %arg5[%c0_9, %c0_10] : memref<1x128xf32, #tpu.memory_space<vmem>>, vector<1x128xf32>
    %13 = vector.broadcast %12 : vector<1x128xf32> to vector<8x128xf32>
    %14 = arith.addf %11, %13 : vector<8x128xf32>
    %cst_11 = arith.constant 0.000000e+00 : f32
    %15 = vector.broadcast %cst_11 : f32 to vector<8x128xf32>
    %16 = arith.maximumf %14, %15 : vector<8x128xf32>
    %17 = arith.truncf %16 : vector<8x128xf32> to vector<8x128xbf16>
    %c0_12 = arith.constant 0 : index
    %c0_13 = arith.constant 0 : index
    %18 = vector.load %arg6[%c0_12, %c0_13] : memref<128x128xbf16, #tpu.memory_space<vmem>>, vector<128x128xbf16>
    %cst_14 = arith.constant dense<0.000000e+00> : vector<8x128xf32>
    %19 = tpu.matmul %17, %18, %cst_14 {dimension_numbers = #tpu.dot_dimension_numbers<[1], [0], [0], [1], [0, 0, 1, 1], [], []>} : vector<8x128xbf16>, vector<128x128xbf16>, vector<8x128xf32> -> vector<8x128xf32>
    %c0_15 = arith.constant 0 : index
    %c0_16 = arith.constant 0 : index
    %20 = vector.load %arg7[%c0_15, %c0_16] : memref<1x128xf32, #tpu.memory_space<vmem>>, vector<1x128xf32>
    %21 = vector.broadcast %20 : vector<1x128xf32> to vector<8x128xf32>
    %22 = arith.addf %19, %21 : vector<8x128xf32>
    %c0_17 = arith.constant 0 : index
    %c0_18 = arith.constant 0 : index
    %23 = vector.load %arg8[%c0_17, %c0_18] : memref<8x128xf32, #tpu.memory_space<vmem>>, vector<8x128xf32>
    tpu.vector_store %arg8[%c0_17, %c0_18], %22 {strides = array<i32>} : memref<8x128xf32, #tpu.memory_space<vmem>>, vector<8x128xf32>,
    return
  }
  func.func @transform_0(%arg0: i32) -> (i32, i32) {
    %c0_i32 = arith.constant 0 : i32
    %c0_i32_0 = arith.constant 0 : i32
    return %arg0, %c0_i32 : i32, i32
  }
  func.func @transform_1(%arg0: i32) -> (i32, i32) {
    %c0_i32 = arith.constant 0 : i32
    %c0_i32_0 = arith.constant 0 : i32
    %c0_i32_1 = arith.constant 0 : i32
    return %c0_i32, %c0_i32_0 : i32, i32
  }
  func.func @transform_2(%arg0: i32) -> (i32, i32) {
    %c0_i32 = arith.constant 0 : i32
    %c0_i32_0 = arith.constant 0 : i32
    %c0_i32_1 = arith.constant 0 : i32
    return %c0_i32, %c0_i32_0 : i32, i32
  }
  func.func @transform_3(%arg0: i32) -> (i32, i32) {
    %c0_i32 = arith.constant 0 : i32
    %c0_i32_0 = arith.constant 0 : i32
    %c0_i32_1 = arith.constant 0 : i32
    return %c0_i32, %c0_i32_0 : i32, i32
  }
  func.func @transform_4(%arg0: i32) -> (i32, i32) {
    %c0_i32 = arith.constant 0 : i32
    %c0_i32_0 = arith.constant 0 : i32
    %c0_i32_1 = arith.constant 0 : i32
    return %c0_i32, %c0_i32_0 : i32, i32
  }
  func.func @transform_5(%arg0: i32) -> (i32, i32) {
    %c0_i32 = arith.constant 0 : i32
    %c0_i32_0 = arith.constant 0 : i32
    %c0_i32_1 = arith.constant 0 : i32
    return %c0_i32, %c0_i32_0 : i32, i32
  }
  func.func @transform_6(%arg0: i32) -> (i32, i32) {
    %c0_i32 = arith.constant 0 : i32
    %c0_i32_0 = arith.constant 0 : i32
    %c0_i32_1 = arith.constant 0 : i32
    return %c0_i32, %c0_i32_0 : i32, i32
  }
  func.func @transform_7(%arg0: i32) -> (i32, i32) {
    %c0_i32 = arith.constant 0 : i32
    %c0_i32_0 = arith.constant 0 : i32
    return %arg0, %c0_i32 : i32, i32
  }
}

</mosaic_0001>

<bundles_post_ra>
// kernel: tpu_custom_call.1
= control target key start
LH: loop header
LB: loop body
LE: loop exit
PB: predicated region body
PF: predicated region fallthrough
CT: control target
= control target key end

     0   :  { %12 = vsyncpa [#allocation3], 0  ;;  %s980_s0 = inlined_call_operand.hbm [shape: f32[2,256], index: 0, kind: input, shape index: {}]   ;;  %s981_s1 = inlined_call_operand.hbm [shape: bf16[256,128], index: 1, kind: input, shape index: {}]   ;;  %s982_s2 = inlined_call_operand.vmem [shape: f32[1,128], index: 2, kind: input, shape index: {}]   ;;  %s983_s3 = inlined_call_operand.hbm [shape: bf16[128,128], index: 3, kind: input, shape index: {}]   ;;  %s984_s4 = inlined_call_operand.vmem [shape: f32[1,128], index: 4, kind: input, shape index: {}]   ;;  %s985_s5 = inlined_call_operand.hbm [shape: bf16[128,128], index: 5, kind: input, shape index: {}]   ;;  %s986_s6 = inlined_call_operand.vmem [shape: f32[1,128], index: 6, kind: input, shape index: {}]   ;;  %s987_s7 = inlined_call_operand.hbm [shape: f32[2,128], index: 7, kind: output, shape index: {}]  }
   0x1   :  { %13 = vsyncpa [#allocation6], 0 }
   0x2   :  { %14 = vsyncpa [#allocation9], 0 }
   0x3   :  { %15 = vsyncpa [#allocation4], 0 }
   0x4   :  { %20 = vsyncadd [#allocation3], 192  ;;  %s815_s24 = smov [#allocation5]   ;;  %s816_s26 = smov [#allocation2]  }
   0x5   :  { %s33_s25 = sshll.u32 %s815_s24, 4  ;;  %s21_s27 = sshll.u32 %s816_s26, 4  ;;  %s34_s25 = int_to_ptr.vmem [resolvable:$true] %s33_s25  ;;  %s866_s27 = int_to_ptr.vmem [resolvable:$true] %s21_s27 }
   0x6   :  { %s697_s30 = scalar_lea.hbm %s981_s1, 2048 }
   0x7   :  { %p698_p0 = scmp.ne.s32.totalorder %s981_s1, %s697_s30  ;;  %p701_p1 = scmp.lt.u32.totalorder %s697_s30, %s981_s1 }
   0x9   :  { %p703_p2 = pnand %p701_p1, %p698_p0 }
   0xb   :  { %706 = shalt.err (!%p703_p2)
}
   0xc   :  { %s707_s12 = scalar_lea.vmem %s34_s25, 2048  ;;  %p712_p4 = scmp.lt.s32.totalorder %s34_s25, %s34_s25 }
   0xd   :  { %p708_p3 = scmp.ne.s32.totalorder %s34_s25, %s707_s12  ;;  %p713_p5 = scmp.lt.s32.totalorder %s707_s12, %s707_s12 }
   0xf   :  { %p714_p6 = por %p713_p5, %p712_p4 }
  0x11   :  { %p715_p7 = pnand %p714_p6, %p708_p3 }
  0x13   :  { %718 = shalt.err (!%p715_p7)
}
  0x14   :  { %s817_s13 = smov 64   ;;  %s818_s14 = smov 4  }
  0x15   :  { %39 = dma.hbm_to_vmem [thread:$0]  %s981_s1, 2048, %s34_s25, [#allocation6], %s817_s13, %s817_s13, %s818_s14  }
  0x16   :  { %s719_s19 = scalar_lea.hbm %s980_s0, 64 }
  0x17   :  { %p720_p8 = scmp.ne.s32.totalorder %s980_s0, %s719_s19  ;;  %p723_p9 = scmp.lt.u32.totalorder %s719_s19, %s980_s0 }
  0x19   :  { %p725_p10 = pnand %p723_p9, %p720_p8 }
  0x1b   :  { %728 = shalt.err (!%p725_p10)
}
  0x1c   :  { %s729_s24 = scalar_lea.vmem %s866_s27, 64  ;;  %s733_s1 = scalar_lea.vmem %s866_s27, 256 }
  0x1d   :  { %p730_p11 = scmp.ne.s32.totalorder %s866_s27, %s729_s24  ;;  %p734_p12 = scmp.lt.s32.totalorder %s866_s27, %s866_s27 }
  0x1e   :  { %p735_p13 = scmp.lt.s32.totalorder %s733_s1, %s729_s24 }
  0x20   :  { %p736_p0 = por %p735_p13, %p734_p12 }
  0x22   :  { %p737_p1 = pnand %p736_p0, %p730_p11 }
  0x24   :  { %740 = shalt.err (!%p737_p1)
}
  0x25   :  { %27 = dma.hbm_to_vmem [thread:$0]  %s980_s0, 64, %s866_s27, [#allocation3], %s817_s13, %s817_s13, %s818_s14  }
  0x26   :  { %s819_s28 = smov [#allocation7]   ;;  %s820_s30 = smov [#allocation8]  }
  0x27   :  { %s47_s29 = sshll.u32 %s819_s28, 4  ;;  %s61_s8 = sshll.u32 %s820_s30, 4  ;;  %s48_s29 = int_to_ptr.vmem [resolvable:$true] %s47_s29  ;;  %s904_s8 = int_to_ptr.vmem [resolvable:$true] %s61_s8 }
  0x28   :  { %s741_s11 = scalar_lea.hbm %s983_s3, 1024 }
  0x29   :  { %p742_p2 = scmp.ne.s32.totalorder %s983_s3, %s741_s11  ;;  %p745_p3 = scmp.lt.u32.totalorder %s741_s11, %s983_s3 }
  0x2b   :  { %p747_p4 = pnand %p745_p3, %p742_p2 }
  0x2d   :  { %750 = shalt.err (!%p747_p4)
}
  0x2e   :  { %s751_s0 = scalar_lea.vmem %s48_s29, 1024  ;;  %p756_p6 = scmp.lt.s32.totalorder %s48_s29, %s48_s29 }
  0x2f   :  { %p752_p5 = scmp.ne.s32.totalorder %s48_s29, %s751_s0  ;;  %p757_p7 = scmp.lt.s32.totalorder %s751_s0, %s751_s0 }
  0x31   :  { %p758_p8 = por %p757_p7, %p756_p6 }
  0x33   :  { %p759_p9 = pnand %p758_p8, %p752_p5 }
  0x35   :  { %762 = shalt.err (!%p759_p9)
}
  0x36   :  { %53 = dma.hbm_to_vmem [thread:$0]  %s983_s3, 1024, %s48_s29, [#allocation6], %s817_s13, %s817_s13, %s818_s14  }
  0x37   :  { %s763_s21 = scalar_lea.hbm %s985_s5, 1024 }
  0x38   :  { %p764_p10 = scmp.ne.s32.totalorder %s985_s5, %s763_s21  ;;  %p767_p11 = scmp.lt.u32.totalorder %s763_s21, %s985_s5 }
  0x3a   :  { %p769_p12 = pnand %p767_p11, %p764_p10 }
  0x3c   :  { %772 = shalt.err (!%p769_p12)
}
  0x3d   :  { %s773_s25 = scalar_lea.vmem %s904_s8, 1024  ;;  %p778_p0 = scmp.lt.s32.totalorder %s904_s8, %s904_s8 }
  0x3e   :  { %p774_p13 = scmp.ne.s32.totalorder %s904_s8, %s773_s25  ;;  %p779_p1 = scmp.lt.s32.totalorder %s773_s25, %s773_s25 }
  0x40   :  { %p780_p2 = por %p779_p1, %p778_p0 }
  0x42   :  { %p781_p3 = pnand %p780_p2, %p774_p13 }
  0x44   :  { %784 = shalt.err (!%p781_p3)
}
  0x45   :  { %67 = dma.hbm_to_vmem [thread:$0]  %s985_s5, 1024, %s904_s8, [#allocation9], %s817_s13, %s817_s13, %s818_s14  }
  0x46   :  { %807 = dma.done.wait [#allocation3], 256  }
  0x47   :  { %808 = vsyncadd [#allocation3], 4294967040 }
  0x48   :  { %809 = dma.done.wait [#allocation6], 3072  }
  0x49   :  { %810 = vsyncadd [#allocation6], 4294964224 }
  0x4a   :  { %811 = dma.done.wait [#allocation9], 1024  }
  0x4b   :  { %812 = vsyncadd [#allocation9], 4294966272  ;;  %v821_v0 = vmov 0.0   ;;  %v661_v1 = vld [vmem:[#allocation5 + $0x40] sm:$0xff]   ;;  %v663_v3 = vld [vmem:[#allocation5 + $0x48] sm:$0xff]   ;;  %vm822_vm0 = vmmov 0  }
  0x4c   :  { %609 = vmatprep.subr.bf16.mxu1 %v821_v0  ;;  %v662_v2 = vld [vmem:[#allocation5] sm:$0xff]   ;;  %569 = vmatprep.subr.bf16.mxu0 %v661_v1  ;;  %v664_v4 = vld [vmem:[#allocation5 + $0x8] sm:$0xff]   ;;  %v665_v5 = vld [vmem:[#allocation5 + $0x50] sm:$0xff]  }
  0x4d   :  { %570 = vmatpush3.bf16.msra.mxu0 %v662_v2  ;;  %v666_v6 = vld [vmem:[#allocation5 + $0x10] sm:$0xff]   ;;  %v667_v7 = vld [vmem:[#allocation5 + $0x58] sm:$0xff]   ;;  %v669_v9 = vld [vmem:[#allocation5 + $0x60] sm:$0xff]   ;;  %625 = vmatprep.mubr.msk.bf16.mxu1 %vm822_vm0, %v821_v0 }
  0x4e   :  { %571 = vmatprep.subr.bf16.mxu0 %v663_v3  ;;  %v668_v8 = vld [vmem:[#allocation5 + $0x18] sm:$0xff]   ;;  %v670_v10 = vld [vmem:[#allocation5 + $0x20] sm:$0xff]   ;;  %v671_v11 = vld [vmem:[#allocation5 + $0x68] sm:$0xff]  }
  0x4f   :  { %v672_v12 = vld [vmem:[#allocation5 + $0x28] sm:$0xff]   ;;  %v695_v13 = vld.sshfl [vmem:[#allocation2] sm:$0xff pattern:$0x76325410]  ;;  %v679_v15 = vld [vmem:[#allocation7] sm:$0xff]  }
  0x50   :  { %v696_v14 = vld.sshfl [vmem:[#allocation2 + $0x8] sm:$0xff pattern:$0x76325410]  ;;  %v673_v16 = vld [vmem:[#allocation5 + $0x70] sm:$0xff]   ;;  %610 = vmatpush3.bf16.msra.mxu1 %v679_v15  ;;  %v680_v17 = vld [vmem:[#allocation7 + $0x8] sm:$0xff]  }
  0x51   :  { %572 = vmatpush3.bf16.msra.mxu0 %v664_v4  ;;  %v674_v18 = vld [vmem:[#allocation5 + $0x30] sm:$0xff]   ;;  %v108_v19 = vcombine.high %v695_v13, %v696_v14  ;;  %611 = vmatprep.subr.bf16.mxu1 %v821_v0  ;;  %v675_v20 = vld [vmem:[#allocation5 + $0x78] sm:$0xff]   ;;  %v107_v24 = vcombine.low %v695_v13, %v696_v14  ;;  %v683_v27 = vld [vmem:[#allocation7 + $0x20] sm:$0xff]  }
  0x52   :  { %573 = vmatprep.subr.bf16.mxu0 %v665_v5  ;;  %v681_v22 = vld [vmem:[#allocation7 + $0x10] sm:$0xff]   ;;  %v676_v23 = vld [vmem:[#allocation5 + $0x38] sm:$0xff]   ;;  %v684_v28 = vld [vmem:[#allocation7 + $0x28] sm:$0xff]  }
  0x53   :  { %v112_v21 = vpack.c.bf16 %v108_v19, %v108_v19  ;;  %v682_v25 = vld [vmem:[#allocation7 + $0x18] sm:$0xff]   ;;  %v111_v26 = vpack.c.bf16 %v107_v24, %v107_v24  ;;  %v685_v29 = vld [vmem:[#allocation7 + $0x30] sm:$0xff]   ;;  %v687_v31 = vld [vmem:[#allocation8] sm:$0xff]  }
  0x54   :  { %612 = vmatpush3.bf16.msra.mxu1 %v680_v17  ;;  %v686_v30 = vld [vmem:[#allocation7 + $0x38] sm:$0xff]   ;;  %v688_v32 = vld [vmem:[#allocation8 + $0x8] sm:$0xff]   ;;  %v689_v33 = vld [vmem:[#allocation8 + $0x10] sm:$0xff]  }
  0x55   :  { %574 = vmatpush3.bf16.msra.mxu0 %v666_v6  ;;  %280 = vmatprep.mubr.bf16.mxu0 %v112_v21  ;;  %v690_v34 = vld [vmem:[#allocation8 + $0x18] sm:$0xff]   ;;  %v691_v35 = vld [vmem:[#allocation8 + $0x20] sm:$0xff]   ;;  %v692_v36 = vld [vmem:[#allocation8 + $0x28] sm:$0xff]  }
  0x56   :  { %575 = vmatprep.subr.bf16.mxu0 %v667_v7  ;;  %613 = vmatprep.subr.bf16.mxu1 %v821_v0  ;;  %v534_v38 = vld [vmem:[%s982_s2] ss:$0 sm:$0xff]  ;;  %v694_v47 = vld [vmem:[#allocation8 + $0x38] sm:$0xff]  }
  0x57   :  { %v693_v46 = vld [vmem:[#allocation8 + $0x30] sm:$0xff]  }
  0x58   :  { %614 = vmatpush3.bf16.msra.mxu1 %v681_v22  ;;  %v551_v48 = vld [vmem:[%s984_s4] ss:$0 sm:$0xff] }
  0x59   :  { %576 = vmatpush3.bf16.msra.mxu0 %v668_v8  ;;  %615 = vmatprep.subr.bf16.mxu1 %v821_v0  ;;  %v560_v56 = vld [vmem:[%s986_s6] ss:$0 sm:$0xff] }
  0x5a   :  { %577 = vmatprep.subr.bf16.mxu0 %v669_v9 }
  0x5c   :  { %616 = vmatpush3.bf16.msra.mxu1 %v682_v25 }
  0x5d   :  { %578 = vmatpush3.bf16.msra.mxu0 %v670_v10  ;;  %617 = vmatprep.subr.bf16.mxu1 %v821_v0 }
  0x5e   :  { %579 = vmatprep.subr.bf16.mxu0 %v671_v11 }
  0x60   :  { %618 = vmatpush3.bf16.msra.mxu1 %v683_v27 }
  0x61   :  { %580 = vmatpush3.bf16.msra.mxu0 %v672_v12  ;;  %619 = vmatprep.subr.bf16.mxu1 %v821_v0 }
  0x62   :  { %581 = vmatprep.subr.bf16.mxu0 %v673_v16 }
  0x64   :  { %620 = vmatpush3.bf16.msra.mxu1 %v684_v28 }
  0x65   :  { %582 = vmatpush3.bf16.msra.mxu0 %v674_v18  ;;  %621 = vmatprep.subr.bf16.mxu1 %v821_v0 }
  0x66   :  { %583 = vmatprep.subr.bf16.mxu0 %v675_v20 }
  0x68   :  { %622 = vmatpush3.bf16.msra.mxu1 %v685_v29 }
  0x69   :  { %584 = vmatpush3.bf16.msra.mxu0 %v676_v23  ;;  %623 = vmatprep.subr.bf16.mxu1 %v821_v0 }
  0x6a   :  { %629 = vmatprep.subr.bf16.mxu0 %v821_v0 }
  0x6c   :  { %281 = vmatmul.mubr.bf16.vlgmr.msra.gmra.mrb[0].mxu0 %v111_v26  ;;  %624 = vmatpush3.bf16.msra.mxu1 %v686_v30 }
  0x6d   :  { %645 = vmatprep.mubr.msk.bf16.mxu0 %vm822_vm0, %v821_v0  ;;  %630 = vmatpush3.bf16.msra.mxu0 %v687_v31 }
  0x6e   :  { %631 = vmatprep.subr.bf16.mxu0 %v821_v0 }
  0x71   :  { %632 = vmatpush3.bf16.msra.mxu0 %v688_v32 }
  0x72   :  { %633 = vmatprep.subr.bf16.mxu0 %v821_v0 }
  0x75   :  { %634 = vmatpush3.bf16.msra.mxu0 %v689_v33 }
  0x76   :  { %635 = vmatprep.subr.bf16.mxu0 %v821_v0 }
  0x79   :  { %636 = vmatpush3.bf16.msra.mxu0 %v690_v34 }
  0x7a   :  { %637 = vmatprep.subr.bf16.mxu0 %v821_v0 }
  0x7d   :  { %638 = vmatpush3.bf16.msra.mxu0 %v691_v35 }
  0x7e   :  { %639 = vmatprep.subr.bf16.mxu0 %v821_v0 }
  0x81   :  { %640 = vmatpush3.bf16.msra.mxu0 %v692_v36 }
  0x82   :  { %641 = vmatprep.subr.bf16.mxu0 %v821_v0 }
  0x85   :  { %642 = vmatpush3.bf16.msra.mxu0 %v693_v46 }
  0x86   :  { %643 = vmatprep.subr.bf16.mxu0 %v821_v0 }
  0x89   :  { %644 = vmatpush3.bf16.msra.mxu0 %v694_v47 }
 0x13f   :  { %v585_v37 = vpop.f32.mrb[0].mxu0 }
 0x140   :  { %v586_v39 = vpop.f32.mrb[1].mxu0 }
 0x141   :  { %v587_v40 = vadd.f32 %v586_v39, %v585_v37  ;;  %v588_v41 = vpop.f32.mrb[2].mxu0 }
 0x142   :  { %v589_v42 = vpop.f32.mrb[3].mxu0 }
 0x143   :  { %v283_v43 = vadd.f32 %v587_v40, %v534_v38 }
 0x145   :  { %v288_v44 = vmax.f32 %v283_v43, 0.0 }
 0x147   :  { %v289_v45 = vpack.c.bf16 %v288_v44, %v288_v44 }
 0x149   :  { %626 = vmatmul.mubr.bf16.vlgmr.msra.gmra.mrb[0].mxu1 %v289_v45 }
 0x21c   :  { %v395_v49 = vpop.f32.mrb[0].mxu1 }
 0x21d   :  { %v396_v50 = vadd.f32 %v551_v48, %v395_v49  ;;  %v627_v51 = vpop.f32.mrb[1].mxu1 }
 0x21e   :  { %v398_v52 = vpop.f32.mrb[2].mxu1 }
 0x21f   :  { %v401_v53 = vmax.f32 %v396_v50, 0.0  ;;  %v628_v54 = vpop.f32.mrb[3].mxu1 }
 0x221   :  { %v402_v55 = vpack.c.bf16 %v401_v53, %v401_v53 }
 0x223   :  { %646 = vmatmul.mubr.bf16.vlgmr.msra.gmra.mrb[4].mxu0 %v402_v55 }
 0x2f6   :  { %v508_v57 = vpop.f32.mrb[4].mxu0 }
 0x2f7   :  { %v509_v58 = vadd.f32 %v560_v56, %v508_v57  ;;  %v647_v59 = vpop.f32.mrb[5].mxu0 }
 0x2f8   :  { %v511_v60 = vpop.f32.mrb[6].mxu0 }
 0x2f9   :  { %514 = vst [vmem:[#allocation10] sm:$0xff] %v509_v58  ;;  %v648_v61 = vpop.f32.mrb[7].mxu0 }
 0x2fa   :  { %519 = vsyncadd [#allocation4], 96  ;;  %s823_s4 = smov [#allocation10]  }
 0x2fb   :  { %s520_s30 = sshll.u32 %s823_s4, 4  ;;  %s521_s30 = int_to_ptr.vmem [resolvable:$true] %s520_s30 }
 0x2fc   :  { %s785_s8 = scalar_lea.vmem %s521_s30, 32  ;;  %s789_s9 = scalar_lea.vmem %s521_s30, 128 }
 0x2fd   :  { %p786_p4 = scmp.ne.s32.totalorder %s521_s30, %s785_s8  ;;  %p790_p5 = scmp.lt.s32.totalorder %s521_s30, %s521_s30 }
 0x2fe   :  { %p791_p6 = scmp.lt.s32.totalorder %s789_s9, %s785_s8 }
 0x300   :  { %p792_p7 = por %p791_p6, %p790_p5 }
 0x302   :  { %p793_p8 = pnand %p792_p7, %p786_p4 }
 0x304   :  { %796 = shalt.err (!%p793_p8)
}
 0x305   :  { %s797_s11 = scalar_lea.hbm %s987_s7, 32 }
 0x306   :  { %p798_p9 = scmp.ne.s32.totalorder %s987_s7, %s797_s11  ;;  %p801_p10 = scmp.lt.u32.totalorder %s797_s11, %s987_s7 }
 0x308   :  { %p803_p11 = pnand %p801_p10, %p798_p9 }
 0x30a   :  { %806 = shalt.err (!%p803_p11)
}
 0x30b   :  { %s824_s0 = smov 32   ;;  %s825_s27 = smov 2  }
 0x30c   :  { %526 = dma.vmem_to_hbm [thread:$0]  %s521_s30, 32, %s987_s7, [#allocation4], %s824_s0, %s824_s0, %s825_s27  }
 0x30d   :  { %813 = dma.done.wait [#allocation4], 128  }
 0x30e   :  { %814 = vsyncadd [#allocation4], 4294967168 }
 0x30f   :  { %530 = vsyncpa [#allocation3], 1 }
 0x310   :  { %531 = vsyncpa [#allocation6], 1 }
 0x311   :  { %532 = vsyncpa [#allocation9], 1 }
 0x312   :  { %533 = vsyncpa [#allocation4], 1 }

// kernel: tpu_custom_call.1
= control target key start
LH: loop header
LB: loop body
LE: loop exit
PB: predicated region body
PF: predicated region fallthrough
CT: control target
= control target key end

     0   :  { %12 = vsyncpa [#allocation3], 0  ;;  %s980_s0 = inlined_call_operand.hbm [shape: f32[2,256], index: 0, kind: input, shape index: {}]   ;;  %s981_s1 = inlined_call_operand.hbm [shape: bf16[256,128], index: 1, kind: input, shape index: {}]   ;;  %s982_s2 = inlined_call_operand.vmem [shape: f32[1,128], index: 2, kind: input, shape index: {}]   ;;  %s983_s3 = inlined_call_operand.hbm [shape: bf16[128,128], index: 3, kind: input, shape index: {}]   ;;  %s984_s4 = inlined_call_operand.vmem [shape: f32[1,128], index: 4, kind: input, shape index: {}]   ;;  %s985_s5 = inlined_call_operand.hbm [shape: bf16[128,128], index: 5, kind: input, shape index: {}]   ;;  %s986_s6 = inlined_call_operand.vmem [shape: f32[1,128], index: 6, kind: input, shape index: {}]   ;;  %s987_s7 = inlined_call_operand.hbm [shape: f32[2,128], index: 7, kind: output, shape index: {}]  }
   0x1   :  { %13 = vsyncpa [#allocation6], 0 }
   0x2   :  { %14 = vsyncpa [#allocation9], 0 }
   0x3   :  { %15 = vsyncpa [#allocation4], 0 }
   0x4   :  { %20 = vsyncadd [#allocation3], 192  ;;  %s815_s24 = smov [#allocation5]   ;;  %s816_s26 = smov [#allocation2]  }
   0x5   :  { %s33_s25 = sshll.u32 %s815_s24, 4  ;;  %s21_s27 = sshll.u32 %s816_s26, 4  ;;  %s34_s25 = int_to_ptr.vmem [resolvable:$true] %s33_s25  ;;  %s866_s27 = int_to_ptr.vmem [resolvable:$true] %s21_s27 }
   0x6   :  { %s697_s30 = scalar_lea.hbm %s981_s1, 2048 }
   0x7   :  { %p698_p0 = scmp.ne.s32.totalorder %s981_s1, %s697_s30  ;;  %p701_p1 = scmp.lt.u32.totalorder %s697_s30, %s981_s1 }
   0x9   :  { %p703_p2 = pnand %p701_p1, %p698_p0 }
   0xb   :  { %706 = shalt.err (!%p703_p2)
}
   0xc   :  { %s707_s12 = scalar_lea.vmem %s34_s25, 2048  ;;  %p712_p4 = scmp.lt.s32.totalorder %s34_s25, %s34_s25 }
   0xd   :  { %p708_p3 = scmp.ne.s32.totalorder %s34_s25, %s707_s12  ;;  %p713_p5 = scmp.lt.s32.totalorder %s707_s12, %s707_s12 }
   0xf   :  { %p714_p6 = por %p713_p5, %p712_p4 }
  0x11   :  { %p715_p7 = pnand %p714_p6, %p708_p3 }
  0x13   :  { %718 = shalt.err (!%p715_p7)
}
  0x14   :  { %s817_s13 = smov 64   ;;  %s818_s14 = smov 4  }
  0x15   :  { %39 = dma.hbm_to_vmem [thread:$0]  %s981_s1, 2048, %s34_s25, [#allocation6], %s817_s13, %s817_s13, %s818_s14  }
  0x16   :  { %s719_s19 = scalar_lea.hbm %s980_s0, 64 }
  0x17   :  { %p720_p8 = scmp.ne.s32.totalorder %s980_s0, %s719_s19  ;;  %p723_p9 = scmp.lt.u32.totalorder %s719_s19, %s980_s0 }
  0x19   :  { %p725_p10 = pnand %p723_p9, %p720_p8 }
  0x1b   :  { %728 = shalt.err (!%p725_p10)
}
  0x1c   :  { %s729_s24 = scalar_lea.vmem %s866_s27, 64  ;;  %s733_s1 = scalar_lea.vmem %s866_s27, 256 }
  0x1d   :  { %p730_p11 = scmp.ne.s32.totalorder %s866_s27, %s729_s24  ;;  %p734_p12 = scmp.lt.s32.totalorder %s866_s27, %s866_s27 }
  0x1e   :  { %p735_p13 = scmp.lt.s32.totalorder %s733_s1, %s729_s24 }
  0x20   :  { %p736_p0 = por %p735_p13, %p734_p12 }
  0x22   :  { %p737_p1 = pnand %p736_p0, %p730_p11 }
  0x24   :  { %740 = shalt.err (!%p737_p1)
}
  0x25   :  { %27 = dma.hbm_to_vmem [thread:$0]  %s980_s0, 64, %s866_s27, [#allocation3], %s817_s13, %s817_s13, %s818_s14  }
  0x26   :  { %s819_s28 = smov [#allocation7]   ;;  %s820_s30 = smov [#allocation8]  }
  0x27   :  { %s47_s29 = sshll.u32 %s819_s28, 4  ;;  %s61_s8 = sshll.u32 %s820_s30, 4  ;;  %s48_s29 = int_to_ptr.vmem [resolvable:$true] %s47_s29  ;;  %s904_s8 = int_to_ptr.vmem [resolvable:$true] %s61_s8 }
  0x28   :  { %s741_s11 = scalar_lea.hbm %s983_s3, 1024 }
  0x29   :  { %p742_p2 = scmp.ne.s32.totalorder %s983_s3, %s741_s11  ;;  %p745_p3 = scmp.lt.u32.totalorder %s741_s11, %s983_s3 }
  0x2b   :  { %p747_p4 = pnand %p745_p3, %p742_p2 }
  0x2d   :  { %750 = shalt.err (!%p747_p4)
}
  0x2e   :  { %s751_s0 = scalar_lea.vmem %s48_s29, 1024  ;;  %p756_p6 = scmp.lt.s32.totalorder %s48_s29, %s48_s29 }
  0x2f   :  { %p752_p5 = scmp.ne.s32.totalorder %s48_s29, %s751_s0  ;;  %p757_p7 = scmp.lt.s32.totalorder %s751_s0, %s751_s0 }
  0x31   :  { %p758_p8 = por %p757_p7, %p756_p6 }
  0x33   :  { %p759_p9 = pnand %p758_p8, %p752_p5 }
  0x35   :  { %762 = shalt.err (!%p759_p9)
}
  0x36   :  { %53 = dma.hbm_to_vmem [thread:$0]  %s983_s3, 1024, %s48_s29, [#allocation6], %s817_s13, %s817_s13, %s818_s14  }
  0x37   :  { %s763_s21 = scalar_lea.hbm %s985_s5, 1024 }
  0x38   :  { %p764_p10 = scmp.ne.s32.totalorder %s985_s5, %s763_s21  ;;  %p767_p11 = scmp.lt.u32.totalorder %s763_s21, %s985_s5 }
  0x3a   :  { %p769_p12 = pnand %p767_p11, %p764_p10 }
  0x3c   :  { %772 = shalt.err (!%p769_p12)
}
  0x3d   :  { %s773_s25 = scalar_lea.vmem %s904_s8, 1024  ;;  %p778_p0 = scmp.lt.s32.totalorder %s904_s8, %s904_s8 }
  0x3e   :  { %p774_p13 = scmp.ne.s32.totalorder %s904_s8, %s773_s25  ;;  %p779_p1 = scmp.lt.s32.totalorder %s773_s25, %s773_s25 }
  0x40   :  { %p780_p2 = por %p779_p1, %p778_p0 }
  0x42   :  { %p781_p3 = pnand %p780_p2, %p774_p13 }
  0x44   :  { %784 = shalt.err (!%p781_p3)
}
  0x45   :  { %67 = dma.hbm_to_vmem [thread:$0]  %s985_s5, 1024, %s904_s8, [#allocation9], %s817_s13, %s817_s13, %s818_s14  }
  0x46   :  { %807 = dma.done.wait [#allocation3], 256  }
  0x47   :  { %808 = vsyncadd [#allocation3], 4294967040 }
  0x48   :  { %809 = dma.done.wait [#allocation6], 3072  }
  0x49   :  { %810 = vsyncadd [#allocation6], 4294964224 }
  0x4a   :  { %811 = dma.done.wait [#allocation9], 1024  }
  0x4b   :  { %812 = vsyncadd [#allocation9], 4294966272  ;;  %v821_v0 = vmov 0.0   ;;  %v661_v1 = vld [vmem:[#allocation5 + $0x40] sm:$0xff]   ;;  %v663_v3 = vld [vmem:[#allocation5 + $0x48] sm:$0xff]   ;;  %vm822_vm0 = vmmov 0  }
  0x4c   :  { %609 = vmatprep.subr.bf16.mxu1 %v821_v0  ;;  %v662_v2 = vld [vmem:[#allocation5] sm:$0xff]   ;;  %569 = vmatprep.subr.bf16.mxu0 %v661_v1  ;;  %v664_v4 = vld [vmem:[#allocation5 + $0x8] sm:$0xff]   ;;  %v665_v5 = vld [vmem:[#allocation5 + $0x50] sm:$0xff]  }
  0x4d   :  { %570 = vmatpush3.bf16.msra.mxu0 %v662_v2  ;;  %v666_v6 = vld [vmem:[#allocation5 + $0x10] sm:$0xff]   ;;  %v667_v7 = vld [vmem:[#allocation5 + $0x58] sm:$0xff]   ;;  %v669_v9 = vld [vmem:[#allocation5 + $0x60] sm:$0xff]   ;;  %625 = vmatprep.mubr.msk.bf16.mxu1 %vm822_vm0, %v821_v0 }
  0x4e   :  { %571 = vmatprep.subr.bf16.mxu0 %v663_v3  ;;  %v668_v8 = vld [vmem:[#allocation5 + $0x18] sm:$0xff]   ;;  %v670_v10 = vld [vmem:[#allocation5 + $0x20] sm:$0xff]   ;;  %v671_v11 = vld [vmem:[#allocation5 + $0x68] sm:$0xff]  }
  0x4f   :  { %v672_v12 = vld [vmem:[#allocation5 + $0x28] sm:$0xff]   ;;  %v695_v13 = vld.sshfl [vmem:[#allocation2] sm:$0xff pattern:$0x76325410]  ;;  %v679_v15 = vld [vmem:[#allocation7] sm:$0xff]  }
  0x50   :  { %v696_v14 = vld.sshfl [vmem:[#allocation2 + $0x8] sm:$0xff pattern:$0x76325410]  ;;  %v673_v16 = vld [vmem:[#allocation5 + $0x70] sm:$0xff]   ;;  %610 = vmatpush3.bf16.msra.mxu1 %v679_v15  ;;  %v680_v17 = vld [vmem:[#allocation7 + $0x8] sm:$0xff]  }
  0x51   :  { %572 = vmatpush3.bf16.msra.mxu0 %v664_v4  ;;  %v674_v18 = vld [vmem:[#allocation5 + $0x30] sm:$0xff]   ;;  %v108_v19 = vcombine.high %v695_v13, %v696_v14  ;;  %611 = vmatprep.subr.bf16.mxu1 %v821_v0  ;;  %v675_v20 = vld [vmem:[#allocation5 + $0x78] sm:$0xff]   ;;  %v107_v24 = vcombine.low %v695_v13, %v696_v14  ;;  %v683_v27 = vld [vmem:[#allocation7 + $0x20] sm:$0xff]  }
  0x52   :  { %573 = vmatprep.subr.bf16.mxu0 %v665_v5  ;;  %v681_v22 = vld [vmem:[#allocation7 + $0x10] sm:$0xff]   ;;  %v676_v23 = vld [vmem:[#allocation5 + $0x38] sm:$0xff]   ;;  %v684_v28 = vld [vmem:[#allocation7 + $0x28] sm:$0xff]  }
  0x53   :  { %v112_v21 = vpack.c.bf16 %v108_v19, %v108_v19  ;;  %v682_v25 = vld [vmem:[#allocation7 + $0x18] sm:$0xff]   ;;  %v111_v26 = vpack.c.bf16 %v107_v24, %v107_v24  ;;  %v685_v29 = vld [vmem:[#allocation7 + $0x30] sm:$0xff]   ;;  %v687_v31 = vld [vmem:[#allocation8] sm:$0xff]  }
  0x54   :  { %612 = vmatpush3.bf16.msra.mxu1 %v680_v17  ;;  %v686_v30 = vld [vmem:[#allocation7 + $0x38] sm:$0xff]   ;;  %v688_v32 = vld [vmem:[#allocation8 + $0x8] sm:$0xff]   ;;  %v689_v33 = vld [vmem:[#allocation8 + $0x10] sm:$0xff]  }
  0x55   :  { %574 = vmatpush3.bf16.msra.mxu0 %v666_v6  ;;  %280 = vmatprep.mubr.bf16.mxu0 %v112_v21  ;;  %v690_v34 = vld [vmem:[#allocation8 + $0x18] sm:$0xff]   ;;  %v691_v35 = vld [vmem:[#allocation8 + $0x20] sm:$0xff]   ;;  %v692_v36 = vld [vmem:[#allocation8 + $0x28] sm:$0xff]  }
  0x56   :  { %575 = vmatprep.subr.bf16.mxu0 %v667_v7  ;;  %613 = vmatprep.subr.bf16.mxu1 %v821_v0  ;;  %v534_v38 = vld [vmem:[%s982_s2] ss:$0 sm:$0xff]  ;;  %v694_v47 = vld [vmem:[#allocation8 + $0x38] sm:$0xff]  }
  0x57   :  { %v693_v46 = vld [vmem:[#allocation8 + $0x30] sm:$0xff]  }
  0x58   :  { %614 = vmatpush3.bf16.msra.mxu1 %v681_v22  ;;  %v551_v48 = vld [vmem:[%s984_s4] ss:$0 sm:$0xff] }
  0x59   :  { %576 = vmatpush3.bf16.msra.mxu0 %v668_v8  ;;  %615 = vmatprep.subr.bf16.mxu1 %v821_v0  ;;  %v560_v56 = vld [vmem:[%s986_s6] ss:$0 sm:$0xff] }
  0x5a   :  { %577 = vmatprep.subr.bf16.mxu0 %v669_v9 }
  0x5c   :  { %616 = vmatpush3.bf16.msra.mxu1 %v682_v25 }
  0x5d   :  { %578 = vmatpush3.bf16.msra.mxu0 %v670_v10  ;;  %617 = vmatprep.subr.bf16.mxu1 %v821_v0 }
  0x5e   :  { %579 = vmatprep.subr.bf16.mxu0 %v671_v11 }
  0x60   :  { %618 = vmatpush3.bf16.msra.mxu1 %v683_v27 }
  0x61   :  { %580 = vmatpush3.bf16.msra.mxu0 %v672_v12  ;;  %619 = vmatprep.subr.bf16.mxu1 %v821_v0 }
  0x62   :  { %581 = vmatprep.subr.bf16.mxu0 %v673_v16 }
  0x64   :  { %620 = vmatpush3.bf16.msra.mxu1 %v684_v28 }
  0x65   :  { %582 = vmatpush3.bf16.msra.mxu0 %v674_v18  ;;  %621 = vmatprep.subr.bf16.mxu1 %v821_v0 }
  0x66   :  { %583 = vmatprep.subr.bf16.mxu0 %v675_v20 }
  0x68   :  { %622 = vmatpush3.bf16.msra.mxu1 %v685_v29 }
  0x69   :  { %584 = vmatpush3.bf16.msra.mxu0 %v676_v23  ;;  %623 = vmatprep.subr.bf16.mxu1 %v821_v0 }
  0x6a   :  { %629 = vmatprep.subr.bf16.mxu0 %v821_v0 }
  0x6c   :  { %281 = vmatmul.mubr.bf16.vlgmr.msra.gmra.mrb[0].mxu0 %v111_v26  ;;  %624 = vmatpush3.bf16.msra.mxu1 %v686_v30 }
  0x6d   :  { %645 = vmatprep.mubr.msk.bf16.mxu0 %vm822_vm0, %v821_v0  ;;  %630 = vmatpush3.bf16.msra.mxu0 %v687_v31 }
  0x6e   :  { %631 = vmatprep.subr.bf16.mxu0 %v821_v0 }
  0x71   :  { %632 = vmatpush3.bf16.msra.mxu0 %v688_v32 }
  0x72   :  { %633 = vmatprep.subr.bf16.mxu0 %v821_v0 }
  0x75   :  { %634 = vmatpush3.bf16.msra.mxu0 %v689_v33 }
  0x76   :  { %635 = vmatprep.subr.bf16.mxu0 %v821_v0 }
  0x79   :  { %636 = vmatpush3.bf16.msra.mxu0 %v690_v34 }
  0x7a   :  { %637 = vmatprep.subr.bf16.mxu0 %v821_v0 }
  0x7d   :  { %638 = vmatpush3.bf16.msra.mxu0 %v691_v35 }
  0x7e   :  { %639 = vmatprep.subr.bf16.mxu0 %v821_v0 }
  0x81   :  { %640 = vmatpush3.bf16.msra.mxu0 %v692_v36 }
  0x82   :  { %641 = vmatprep.subr.bf16.mxu0 %v821_v0 }
  0x85   :  { %642 = vmatpush3.bf16.msra.mxu0 %v693_v46 }
  0x86   :  { %643 = vmatprep.subr.bf16.mxu0 %v821_v0 }
  0x89   :  { %644 = vmatpush3.bf16.msra.mxu0 %v694_v47 }
 0x13f   :  { %v585_v37 = vpop.f32.mrb[0].mxu0 }
 0x140   :  { %v586_v39 = vpop.f32.mrb[1].mxu0 }
 0x141   :  { %v587_v40 = vadd.f32 %v586_v39, %v585_v37  ;;  %v588_v41 = vpop.f32.mrb[2].mxu0 }
 0x142   :  { %v589_v42 = vpop.f32.mrb[3].mxu0 }
 0x143   :  { %v283_v43 = vadd.f32 %v587_v40, %v534_v38 }
 0x145   :  { %v288_v44 = vmax.f32 %v283_v43, 0.0 }
 0x147   :  { %v289_v45 = vpack.c.bf16 %v288_v44, %v288_v44 }
 0x149   :  { %626 = vmatmul.mubr.bf16.vlgmr.msra.gmra.mrb[0].mxu1 %v289_v45 }
 0x21c   :  { %v395_v49 = vpop.f32.mrb[0].mxu1 }
 0x21d   :  { %v396_v50 = vadd.f32 %v551_v48, %v395_v49  ;;  %v627_v51 = vpop.f32.mrb[1].mxu1 }
 0x21e   :  { %v398_v52 = vpop.f32.mrb[2].mxu1 }
 0x21f   :  { %v401_v53 = vmax.f32 %v396_v50, 0.0  ;;  %v628_v54 = vpop.f32.mrb[3].mxu1 }
 0x221   :  { %v402_v55 = vpack.c.bf16 %v401_v53, %v401_v53 }
 0x223   :  { %646 = vmatmul.mubr.bf16.vlgmr.msra.gmra.mrb[4].mxu0 %v402_v55 }
 0x2f6   :  { %v508_v57 = vpop.f32.mrb[4].mxu0 }
 0x2f7   :  { %v509_v58 = vadd.f32 %v560_v56, %v508_v57  ;;  %v647_v59 = vpop.f32.mrb[5].mxu0 }
 0x2f8   :  { %v511_v60 = vpop.f32.mrb[6].mxu0 }
 0x2f9   :  { %514 = vst [vmem:[#allocation10] sm:$0xff] %v509_v58  ;;  %v648_v61 = vpop.f32.mrb[7].mxu0 }
 0x2fa   :  { %519 = vsyncadd [#allocation4], 96  ;;  %s823_s4 = smov [#allocation10]  }
 0x2fb   :  { %s520_s30 = sshll.u32 %s823_s4, 4  ;;  %s521_s30 = int_to_ptr.vmem [resolvable:$true] %s520_s30 }
 0x2fc   :  { %s785_s8 = scalar_lea.vmem %s521_s30, 32  ;;  %s789_s9 = scalar_lea.vmem %s521_s30, 128 }
 0x2fd   :  { %p786_p4 = scmp.ne.s32.totalorder %s521_s30, %s785_s8  ;;  %p790_p5 = scmp.lt.s32.totalorder %s521_s30, %s521_s30 }
 0x2fe   :  { %p791_p6 = scmp.lt.s32.totalorder %s789_s9, %s785_s8 }
 0x300   :  { %p792_p7 = por %p791_p6, %p790_p5 }
 0x302   :  { %p793_p8 = pnand %p792_p7, %p786_p4 }
 0x304   :  { %796 = shalt.err (!%p793_p8)
}
 0x305   :  { %s797_s11 = scalar_lea.hbm %s987_s7, 32 }
 0x306   :  { %p798_p9 = scmp.ne.s32.totalorder %s987_s7, %s797_s11  ;;  %p801_p10 = scmp.lt.u32.totalorder %s797_s11, %s987_s7 }
 0x308   :  { %p803_p11 = pnand %p801_p10, %p798_p9 }
 0x30a   :  { %806 = shalt.err (!%p803_p11)
}
 0x30b   :  { %s824_s0 = smov 32   ;;  %s825_s27 = smov 2  }
 0x30c   :  { %526 = dma.vmem_to_hbm [thread:$0]  %s521_s30, 32, %s987_s7, [#allocation4], %s824_s0, %s824_s0, %s825_s27  }
 0x30d   :  { %813 = dma.done.wait [#allocation4], 128  }
 0x30e   :  { %814 = vsyncadd [#allocation4], 4294967168 }
 0x30f   :  { %530 = vsyncpa [#allocation3], 1 }
 0x310   :  { %531 = vsyncpa [#allocation6], 1 }
 0x311   :  { %532 = vsyncpa [#allocation9], 1 }
 0x312   :  { %533 = vsyncpa [#allocation4], 1 }

</bundles_post_ra>
